<compile_context>
chip_gen: v7x
topology: tpu7x:2x2x1
jax: 0.10.0
libtpu: 0.0.40
codegen_flags: <defaults>
</compile_context>

<pallas_src>
import functools
import math

import jax
import jax.numpy as jnp
from jax.experimental import pallas as pl
from jax.experimental.pallas import tpu as pltpu


def _round_up(x, m):
    return ((x + m - 1) // m) * m


# ---------------------------------------------------------------------------
# Kernel bodies
# ---------------------------------------------------------------------------

def _attn_pool_single_pass_kernel(x_ref, mask_ref, wa_ref, h_ref, *, scale):
    """Whole (padded) sequence resident in VMEM: plain softmax, no scratch carry.

    x_ref   : (TB, TS, Hp) bf16 activations
    mask_ref: (TB, 1, TS)  f32 additive mask (padded positions = -1e30)
    wa_ref  : (1, 1, Hp)   bf16 attn.weight row (zero padded)
    h_ref   : (TB, 1, Hp)  f32 pooled hidden state
    """
    x = x_ref[...]                                    # bf16 straight to the MXU
    tb, _, hp = x.shape
    wa = jnp.broadcast_to(wa_ref[...], (tb, 1, hp))   # bf16 (TB, 1, Hp)

    # logits: NT-form matvec; the big x tile is the stationary MXU operand.
    s = jnp.einsum('bqd,bkd->bqk', wa, x,
                   preferred_element_type=jnp.float32)       # (TB, 1, TS) f32
    s = s * scale + mask_ref[...]

    m = jnp.max(s, axis=-1, keepdims=True)                   # (TB, 1, 1)
    p = jnp.exp(s - m)                                       # (TB, 1, TS) f32
    l = jnp.sum(p, axis=-1, keepdims=True)                   # (TB, 1, 1)

    # weighted sum: fully canonical MXU matmul, bf16 inputs / f32 accumulate.
    h = jnp.einsum('bqk,bkd->bqd', p.astype(x.dtype), x,
                   preferred_element_type=jnp.float32)       # (TB, 1, Hp)
    h_ref[...] = (h * pl.reciprocal(l, approx=True)).astype(h_ref.dtype)


def _attn_pool_online_kernel(x_ref, mask_ref, wa_ref, h_ref,
                             m_sc, l_sc, acc_sc, *, scale):
    """Long-sequence path: online softmax over the tiled ("arbitrary") seq axis."""
    s_idx = pl.program_id(1)

    @pl.when(s_idx == 0)
    def _():
        m_sc[...] = jnp.full_like(m_sc, -jnp.inf)
        l_sc[...] = jnp.zeros_like(l_sc)
        acc_sc[...] = jnp.zeros_like(acc_sc)

    x = x_ref[...]                                    # bf16, no f32 upcast
    tb, _, hp = x.shape
    wa = jnp.broadcast_to(wa_ref[...], (tb, 1, hp))   # bf16 (TB, 1, Hp)

    s = jnp.einsum('bqd,bkd->bqk', wa, x,
                   preferred_element_type=jnp.float32)       # (TB, 1, TS)
    s = s * scale + mask_ref[...]

    m_prev = m_sc[...]                                       # (TB, 1, 1)
    m_new = jnp.maximum(m_prev, jnp.max(s, axis=-1, keepdims=True))
    alpha = jnp.exp(m_prev - m_new)                          # (TB, 1, 1)
    p = jnp.exp(s - m_new)                                   # (TB, 1, TS) f32

    l_sc[...] = alpha * l_sc[...] + jnp.sum(p, axis=-1, keepdims=True)
    acc_sc[...] = alpha * acc_sc[...] + jnp.einsum(
        'bqk,bkd->bqd', p.astype(x.dtype), x,
        preferred_element_type=jnp.float32)
    m_sc[...] = m_new

    @pl.when(s_idx == pl.num_programs(1) - 1)
    def _():
        inv_l = pl.reciprocal(l_sc[...], approx=True)        # EUP slot, ~free
        h_ref[...] = (acc_sc[...] * inv_l).astype(h_ref.dtype)


# ---------------------------------------------------------------------------
# Wrapper
# ---------------------------------------------------------------------------

def dot_attention(output, mask, attn_w, fc_w, fc_b, *,
                  tb=8, block_bytes=4 * 1024 * 1024, max_seq_block=None,
                  activation_dtype=jnp.bfloat16):
    """output: (B,S,H) activations, mask: (B,S) additive mask,
       attn_w: (1,H) [torch attn.weight], fc_w: (O,H) [torch fc.weight], fc_b: (O,)."""
    B, S, H = output.shape
    scale = 1.0 / math.sqrt(H)        # uses the true hidden_size, not padded Hp

    Hp = _round_up(H, 128)

    # Batch tile: keep >= 2 "parallel" batch grid steps when B allows (v7x has
    # two TensorCores sharing the parallel axis); grow the seq block otherwise.
    TB = min(tb, _round_up(B, 8))
    while TB > 8 and _round_up(B, TB) // TB < 2:
        TB //= 2
    Bp = _round_up(B, TB)

    # Seq block: biggest multiple of 128 keeping the bf16 activation block
    # ~block_bytes (2-4+ MiB amortizes the ~0.35us grid-step overhead).  If the
    # whole padded sequence fits, collapse the seq axis -> single-pass kernel.
    ts_budget = max(128, (block_bytes // (TB * Hp * 2)) // 128 * 128)
    if max_seq_block is not None:
        ts_budget = max(128, (max_seq_block // 128) * 128)
    Sp_full = _round_up(S, 128)
    single_pass = Sp_full <= ts_budget
    TS = Sp_full if single_pass else ts_budget
    Sp = Sp_full if single_pass else _round_up(S, TS)

    # Activations travel HBM->VMEM in bf16 (kernel is pure HBM streaming).
    x = jnp.pad(output.astype(activation_dtype),
                ((0, Bp - B), (0, Sp - S), (0, Hp - H)))
    # Clamp so fully-masked tiles never produce (-inf)-(-inf)=NaN; padded seq
    # positions / batch rows are masked out entirely.
    m = jnp.maximum(mask.astype(jnp.float32), -1e30)
    m = jnp.pad(m, ((0, Bp - B), (0, Sp - S)), constant_values=-1e30)
    m = m.reshape(Bp, 1, Sp)
    wa = jnp.pad(attn_w.astype(activation_dtype),
                 ((0, 0), (0, Hp - H))).reshape(1, 1, Hp)

    cost = pl.CostEstimate(
        flops=4 * B * S * H,                 # logits matvec + weighted sum
        transcendentals=B * S,               # softmax exp
        bytes_accessed=(Bp * Sp * Hp * 2     # bf16 activations
                        + Bp * Sp * 4        # f32 mask
                        + Bp * Hp * 4))      # f32 pooled output

    out_shape = jax.ShapeDtypeStruct((Bp, 1, Hp), jnp.float32)
    vmem_limit = 48 * 1024 * 1024            # v7x-safe (64 MiB physical VMEM)

    if single_pass:
        h = pl.pallas_call(
            functools.partial(_attn_pool_single_pass_kernel, scale=scale),
            out_shape=out_shape,
            grid_spec=pltpu.PrefetchScalarGridSpec(
                num_scalar_prefetch=0,
                grid=(Bp // TB,),
                in_specs=[
                    pl.BlockSpec((TB, TS, Hp), lambda b: (b, 0, 0)),   # activations
                    pl.BlockSpec((TB, 1, TS), lambda b: (b, 0, 0)),    # mask
                    pl.BlockSpec((1, 1, Hp), lambda b: (0, 0, 0)),     # attn weight
                ],
                out_specs=pl.BlockSpec((TB, 1, Hp), lambda b: (b, 0, 0)),
            ),
            compiler_params=pltpu.CompilerParams(
                dimension_semantics=("parallel",),
                vmem_limit_bytes=vmem_limit),
            cost_estimate=cost,
        )(x, m, wa)
    else:
        h = pl.pallas_call(
            functools.partial(_attn_pool_online_kernel, scale=scale),
            out_shape=out_shape,
            grid_spec=pltpu.PrefetchScalarGridSpec(
                num_scalar_prefetch=0,
                grid=(Bp // TB, Sp // TS),
                in_specs=[
                    pl.BlockSpec((TB, TS, Hp), lambda b, s: (b, s, 0)),   # activations
                    pl.BlockSpec((TB, 1, TS), lambda b, s: (b, 0, s)),    # mask
                    pl.BlockSpec((1, 1, Hp), lambda b, s: (0, 0, 0)),     # attn weight
                ],
                out_specs=pl.BlockSpec((TB, 1, Hp), lambda b, s: (b, 0, 0)),
                scratch_shapes=[
                    pltpu.VMEM((TB, 1, 1), jnp.float32),    # running max
                    pltpu.VMEM((TB, 1, 1), jnp.float32),    # running normalizer
                    pltpu.VMEM((TB, 1, Hp), jnp.float32),   # running weighted sum
                ]),
            compiler_params=pltpu.CompilerParams(
                dimension_semantics=("parallel", "arbitrary"),
                vmem_limit_bytes=vmem_limit),
            cost_estimate=cost,
        )(x, m, wa)

    h = h.reshape(Bp, Hp)[:B, :H].astype(output.dtype)
    # Tiny final linear stays in XLA (keeps the kernel output lane-dense);
    # dropout == identity in eval mode.
    return h @ fc_w.T.astype(output.dtype) + fc_b.astype(output.dtype)


# ---------------------------------------------------------------------------
# Reference + tests
# ---------------------------------------------------------------------------

def dot_attention_ref(output, mask, attn_w, fc_w, fc_b):
    """Pure-JAX reference mirroring the PyTorch forward (dropout = identity)."""
    H = output.shape[-1]
    attn = (output @ attn_w.T).squeeze(-1) / (H ** 0.5)        # (B,S)
    attn = jax.nn.softmax(attn + mask, axis=1)                 # (B,S)
    h = jnp.einsum("bsh,bs->bh", output, attn)                 # (B,H)
    return h @ fc_w.T + fc_b                                   # (B,O)


def _run_case(key, B, S, H, O, **kwargs):
    k1, k2, k3, k4 = jax.random.split(key, 4)
    output = jax.random.normal(k1, (B, S, H), dtype=jnp.float32)
    mask = jnp.zeros((B, S), dtype=jnp.float32)
    mask = mask.at[1, S - 2:].set(-1e9)       # mask out the tail of batch row 1

    attn_w = jax.random.normal(k2, (1, H), dtype=jnp.float32) * 0.1   # attn.weight
    fc_w = jax.random.normal(k3, (O, H), dtype=jnp.float32) * 0.1     # fc.weight
    fc_b = jax.random.normal(k4, (O,), dtype=jnp.float32) * 0.1       # fc.bias

    fn = jax.jit(functools.partial(dot_attention, **kwargs))
    y = jax.block_until_ready(fn(output, mask, attn_w, fc_w, fc_b))
    assert y.shape == (B, O)

    # tight check: reference fed the same bf16-rounded activations / attn weight
    out_bf = output.astype(jnp.bfloat16).astype(jnp.float32)
    wa_bf = attn_w.astype(jnp.bfloat16).astype(jnp.float32)
    y_ref_bf16 = dot_attention_ref(out_bf, mask, wa_bf, fc_w, fc_b)
    assert jnp.allclose(y, y_ref_bf16, rtol=3e-2, atol=3e-2), (y, y_ref_bf16)

    # loose check: pure-f32 reference (bf16 transport is the only delta)
    y_ref = dot_attention_ref(output, mask, attn_w, fc_w, fc_b)
    assert jnp.allclose(y, y_ref, rtol=6e-2, atol=6e-2), (y, y_ref)


if __name__ == "__main__":
    key = jax.random.PRNGKey(0)
    ka, kb, kc = jax.random.split(key, 3)
    # small, unaligned shapes: exercises B/S/H padding + the single-pass kernel
    _run_case(ka, B=2, S=8, H=32, O=2)
    # aligned shapes: 2-wide "parallel" batch grid (v7x megacore), single pass
    _run_case(kb, B=16, S=384, H=128, O=2)
    # force small seq blocks to exercise the online-softmax (multi-step) path
    _run_case(kc, B=16, S=384, H=128, O=2, max_seq_block=128)
    print("KERNEL_OK")
</pallas_src>

<mosaic_0001>
module attributes {stable_mosaic.version = 11 : i64} {
  func.func @_attn_pool_single_pass_kernel(%arg0: i32, %arg1: memref<8x128x128xbf16, #tpu.memory_space<vmem>>, %arg2: memref<8x1x128xf32, #tpu.memory_space<vmem>>, %arg3: memref<1x1x128xbf16, #tpu.memory_space<vmem>>, %arg4: memref<8x1x128xf32, #tpu.memory_space<vmem>>) attributes {dimension_semantics = [#tpu.dimension_semantics<parallel>], iteration_bounds = array<i64: 1>, scalar_prefetch = 0 : i64, scratch_operands = 0 : i64, tpu.core_type = #tpu.core_type<tc>, window_params = [{transform_indices = @transform_0, window_bounds = array<i64: 8, 128, 128>}, {transform_indices = @transform_1, window_bounds = array<i64: 8, 1, 128>}, {pipeline_mode = #tpu.pipeline_mode<synchronous>, transform_indices = @transform_2, window_bounds = array<i64: 1, 1, 128>}, {transform_indices = @transform_3, window_bounds = array<i64: 8, 1, 128>}]} {
    %c0 = arith.constant 0 : index
    %c0_0 = arith.constant 0 : index
    %c0_1 = arith.constant 0 : index
    %0 = vector.load %arg1[%c0, %c0_0, %c0_1] : memref<8x128x128xbf16, #tpu.memory_space<vmem>>, vector<8x128x128xbf16>
    %c0_2 = arith.constant 0 : index
    %c0_3 = arith.constant 0 : index
    %c0_4 = arith.constant 0 : index
    %1 = vector.load %arg3[%c0_2, %c0_3, %c0_4] : memref<1x1x128xbf16, #tpu.memory_space<vmem>>, vector<1x1x128xbf16>
    %2 = vector.shape_cast %1 : vector<1x1x128xbf16> to vector<1x1x128xbf16>
    %3 = vector.broadcast %2 : vector<1x1x128xbf16> to vector<8x1x128xbf16>
    "tpu.trace_start"() <{level = 10 : i32, message = "bqd,bkd->bqk"}> : () -> ()
    %cst = arith.constant dense<0.000000e+00> : vector<8x1x128xf32>
    %4 = tpu.matmul %3, %0, %cst {dimension_numbers = #tpu.dot_dimension_numbers<[2], [2], [1], [1], [0, 0, 0, 1, 1, 1], [0], [0]>} : vector<8x1x128xbf16>, vector<8x128x128xbf16>, vector<8x1x128xf32> -> vector<8x1x128xf32>
    "tpu.trace_stop"() : () -> ()
    %cst_5 = arith.constant 0.176776692 : f32
    %5 = vector.broadcast %cst_5 : f32 to vector<8x1x128xf32>
    %6 = arith.mulf %4, %5 : vector<8x1x128xf32>
    %c0_6 = arith.constant 0 : index
    %c0_7 = arith.constant 0 : index
    %c0_8 = arith.constant 0 : index
    %7 = vector.load %arg2[%c0_6, %c0_7, %c0_8] : memref<8x1x128xf32, #tpu.memory_space<vmem>>, vector<8x1x128xf32>
    %8 = arith.addf %6, %7 : vector<8x1x128xf32>
    %cst_9 = arith.constant dense<0xFF800000> : vector<8x1xf32>
    %9 = vector.multi_reduction <maximumf>, %8, %cst_9 [2] : vector<8x1x128xf32> to vector<8x1xf32>
    %10 = vector.shape_cast %9 : vector<8x1xf32> to vector<8x1x1xf32>
    %11 = vector.broadcast %10 : vector<8x1x1xf32> to vector<8x1x128xf32>
    %12 = arith.subf %8, %11 : vector<8x1x128xf32>
    %13 = math.exp %12 : vector<8x1x128xf32>
    %cst_10 = arith.constant dense<0.000000e+00> : vector<8x1xf32>
    %14 = vector.multi_reduction <add>, %13, %cst_10 [2] : vector<8x1x128xf32> to vector<8x1xf32>
    %15 = vector.shape_cast %14 : vector<8x1xf32> to vector<8x1x1xf32>
    %16 = arith.truncf %13 : vector<8x1x128xf32> to vector<8x1x128xbf16>
    "tpu.trace_start"() <{level = 10 : i32, message = "bqk,bkd->bqd"}> : () -> ()
    %cst_11 = arith.constant dense<0.000000e+00> : vector<8x1x128xf32>
    %17 = tpu.matmul %16, %0, %cst_11 {dimension_numbers = #tpu.dot_dimension_numbers<[2], [1], [1], [2], [0, 0, 0, 1, 1, 2], [0], [0]>} : vector<8x1x128xbf16>, vector<8x128x128xbf16>, vector<8x1x128xf32> -> vector<8x1x128xf32>
    "tpu.trace_stop"() : () -> ()
    %18 = tpu.reciprocal %15 {approx = true} : vector<8x1x1xf32> -> vector<8x1x1xf32>
    %19 = vector.broadcast %18 : vector<8x1x1xf32> to vector<8x1x128xf32>
    %20 = arith.mulf %17, %19 : vector<8x1x128xf32>
    %c0_12 = arith.constant 0 : index
    %c0_13 = arith.constant 0 : index
    %c0_14 = arith.constant 0 : index
    %21 = vector.load %arg4[%c0_12, %c0_13, %c0_14] : memref<8x1x128xf32, #tpu.memory_space<vmem>>, vector<8x1x128xf32>
    tpu.vector_store %arg4[%c0_12, %c0_13, %c0_14], %20 {strides = array<i32>} : memref<8x1x128xf32, #tpu.memory_space<vmem>>, vector<8x1x128xf32>,
    return
  }
  func.func @transform_0(%arg0: i32) -> (i32, i32, i32) {
    %c0_i32 = arith.constant 0 : i32
    %c0_i32_0 = arith.constant 0 : i32
    %c0_i32_1 = arith.constant 0 : i32
    return %arg0, %c0_i32, %c0_i32_0 : i32, i32, i32
  }
  func.func @transform_1(%arg0: i32) -> (i32, i32, i32) {
    %c0_i32 = arith.constant 0 : i32
    %c0_i32_0 = arith.constant 0 : i32
    %c0_i32_1 = arith.constant 0 : i32
    return %arg0, %c0_i32, %c0_i32_0 : i32, i32, i32
  }
  func.func @transform_2(%arg0: i32) -> (i32, i32, i32) {
    %c0_i32 = arith.constant 0 : i32
    %c0_i32_0 = arith.constant 0 : i32
    %c0_i32_1 = arith.constant 0 : i32
    %c0_i32_2 = arith.constant 0 : i32
    return %c0_i32, %c0_i32_0, %c0_i32_1 : i32, i32, i32
  }
  func.func @transform_3(%arg0: i32) -> (i32, i32, i32) {
    %c0_i32 = arith.constant 0 : i32
    %c0_i32_0 = arith.constant 0 : i32
    %c0_i32_1 = arith.constant 0 : i32
    return %arg0, %c0_i32, %c0_i32_0 : i32, i32, i32
  }
}

</mosaic_0001>

<bundles_post_ra>
// kernel: dot_attention.1
= control target key start
LH: loop header
LB: loop body
LE: loop exit
PB: predicated region body
PF: predicated region fallthrough
CT: control target
= control target key end

     0   :  { %v2665_v0 = vmov 0.0   ;;  %vm1928_vm0 = vmmov 0   ;;  %vm872_vm1 = vcmask 1040384   ;;  %s2658_s0 = inlined_call_operand.vmem [shape: bf16[8,128,128], index: 0, kind: input, shape index: {}]   ;;  %s2659_s2 = inlined_call_operand.vmem [shape: bf16[1,1,128], index: 2, kind: input, shape index: {}]   ;;  %s2660_s1 = inlined_call_operand.vmem [shape: f32[8,1,128], index: 1, kind: input, shape index: {}]   ;;  %s2661_s3 = inlined_call_operand.vmem [shape: f32[8,1,128], index: 3, kind: output, shape index: {}]  }
   0x1   :  { %1509 = vmatprep.subr.bf16.mxu0 %v2665_v0  ;;  %1529 = vmatprep.subr.bf16.mxu1 %v2665_v0  ;;  %v1954_v1 = vld [vmem:[%s2658_s0] sm:$0xff]   ;;  %v1972_v3 = vld [vmem:[%s2658_s0 + $0x8] sm:$0xff]   ;;  %v1986_v5 = vld [vmem:[%s2658_s0 + $0x10] sm:$0xff]  }
   0x2   :  { %v1959_v2 = vld [vmem:[%s2658_s0 + $0x40] sm:$0xff]   ;;  %1525 = vmatprep.mubr.msk.bf16.mxu0 %vm1928_vm0, %v2665_v0  ;;  %1545 = vmatprep.mubr.msk.bf16.mxu1 %vm1928_vm0, %v2665_v0  ;;  %v1977_v4 = vld [vmem:[%s2658_s0 + $0x48] sm:$0xff]   ;;  %v1991_v6 = vld [vmem:[%s2658_s0 + $0x50] sm:$0xff]  }
   0x3   :  { %1510 = vmatpush3.bf16.xpose.msra.mxu0 %v1954_v1  ;;  %1530 = vmatpush3.bf16.xpose.msra.mxu1 %v1959_v2  ;;  %v2000_v7 = vld [vmem:[%s2658_s0 + $0x18] sm:$0xff]   ;;  %v2014_v9 = vld [vmem:[%s2658_s0 + $0x20] sm:$0xff]   ;;  %v2028_v11 = vld [vmem:[%s2658_s0 + $0x28] sm:$0xff]  }
   0x4   :  { %1511 = vmatprep.subr.bf16.mxu0 %v2665_v0  ;;  %1531 = vmatprep.subr.bf16.mxu1 %v2665_v0  ;;  %v2005_v8 = vld [vmem:[%s2658_s0 + $0x58] sm:$0xff]   ;;  %v2019_v10 = vld [vmem:[%s2658_s0 + $0x60] sm:$0xff]   ;;  %v2033_v12 = vld [vmem:[%s2658_s0 + $0x68] sm:$0xff]  }
   0x5   :  { %v2042_v13 = vld [vmem:[%s2658_s0 + $0x30] sm:$0xff]   ;;  %v2056_v15 = vld [vmem:[%s2658_s0 + $0x38] sm:$0xff]   ;;  %v2070_v17 = vld [vmem:[%s2659_s2] sm:$0x1] }
   0x6   :  { %v2047_v14 = vld [vmem:[%s2658_s0 + $0x70] sm:$0xff]   ;;  %v2061_v16 = vld [vmem:[%s2658_s0 + $0x78] sm:$0xff]   ;;  %v2075_v18 = vld [vmem:[%s2658_s0 + $0x80] sm:$0xff]  }
   0x7   :  { %v2080_v19 = vld [vmem:[%s2658_s0 + $0xc0] sm:$0xff]   ;;  %v2095_v20 = vld [vmem:[%s2658_s0 + $0x88] sm:$0xff]   ;;  %v2109_v22 = vld [vmem:[%s2658_s0 + $0x90] sm:$0xff]  }
   0x8   :  { %v2100_v21 = vld [vmem:[%s2658_s0 + $0xc8] sm:$0xff]   ;;  %v2114_v23 = vld [vmem:[%s2658_s0 + $0xd0] sm:$0xff]   ;;  %v2123_v24 = vld [vmem:[%s2658_s0 + $0x98] sm:$0xff]  }
   0x9   :  { %v2128_v25 = vld [vmem:[%s2658_s0 + $0xd8] sm:$0xff]   ;;  %v2137_v26 = vld [vmem:[%s2658_s0 + $0xa0] sm:$0xff]   ;;  %v2151_v28 = vld [vmem:[%s2658_s0 + $0xa8] sm:$0xff]  }
   0xa   :  { %v2142_v27 = vld [vmem:[%s2658_s0 + $0xe0] sm:$0xff]   ;;  %v2156_v29 = vld [vmem:[%s2658_s0 + $0xe8] sm:$0xff]   ;;  %v2165_v30 = vld [vmem:[%s2658_s0 + $0xb0] sm:$0xff]  }
   0xb   :  { %1512 = vmatpush3.bf16.xpose.msra.mxu0 %v1972_v3  ;;  %1532 = vmatpush3.bf16.xpose.msra.mxu1 %v1977_v4  ;;  %v2170_v31 = vld [vmem:[%s2658_s0 + $0xf0] sm:$0xff]   ;;  %v2179_v32 = vld [vmem:[%s2658_s0 + $0xb8] sm:$0xff]   ;;  %v2193_v34 = vld [vmem:[%s2658_s0 + $0x100] sm:$0xff]  }
   0xc   :  { %1513 = vmatprep.subr.bf16.mxu0 %v2665_v0  ;;  %1533 = vmatprep.subr.bf16.mxu1 %v2665_v0  ;;  %v2184_v33 = vld [vmem:[%s2658_s0 + $0xf8] sm:$0xff]   ;;  %v2198_v35 = vld [vmem:[%s2658_s0 + $0x140] sm:$0xff]   ;;  %v2213_v36 = vld [vmem:[%s2658_s0 + $0x108] sm:$0xff]  }
   0xd   :  { %v2218_v37 = vld [vmem:[%s2658_s0 + $0x148] sm:$0xff]   ;;  %v2227_v38 = vld [vmem:[%s2658_s0 + $0x110] sm:$0xff]   ;;  %v2241_v40 = vld [vmem:[%s2658_s0 + $0x118] sm:$0xff]  }
   0xe   :  { %v2232_v39 = vld [vmem:[%s2658_s0 + $0x150] sm:$0xff]   ;;  %v2246_v41 = vld [vmem:[%s2658_s0 + $0x158] sm:$0xff]   ;;  %v2255_v42 = vld [vmem:[%s2658_s0 + $0x120] sm:$0xff]  }
   0xf   :  { %v2260_v43 = vld [vmem:[%s2658_s0 + $0x160] sm:$0xff]   ;;  %v2269_v44 = vld [vmem:[%s2658_s0 + $0x128] sm:$0xff]   ;;  %v2283_v46 = vld [vmem:[%s2658_s0 + $0x130] sm:$0xff]  }
  0x10   :  { %v2274_v45 = vld [vmem:[%s2658_s0 + $0x168] sm:$0xff]   ;;  %v2288_v47 = vld [vmem:[%s2658_s0 + $0x170] sm:$0xff]   ;;  %v2297_v48 = vld [vmem:[%s2658_s0 + $0x138] sm:$0xff]  }
  0x11   :  { %v2302_v49 = vld [vmem:[%s2658_s0 + $0x178] sm:$0xff]   ;;  %v2311_v50 = vld [vmem:[%s2658_s0 + $0x180] sm:$0xff]   ;;  %v2331_v52 = vld [vmem:[%s2658_s0 + $0x188] sm:$0xff]  }
  0x12   :  { %v2316_v51 = vld [vmem:[%s2658_s0 + $0x1c0] sm:$0xff]   ;;  %v2336_v53 = vld [vmem:[%s2658_s0 + $0x1c8] sm:$0xff]   ;;  %v2345_v54 = vld [vmem:[%s2658_s0 + $0x190] sm:$0xff]  }
  0x13   :  { %1514 = vmatpush3.bf16.xpose.msra.mxu0 %v1986_v5  ;;  %1534 = vmatpush3.bf16.xpose.msra.mxu1 %v1991_v6  ;;  %v2350_v55 = vld [vmem:[%s2658_s0 + $0x1d0] sm:$0xff]   ;;  %v2359_v56 = vld [vmem:[%s2658_s0 + $0x198] sm:$0xff]   ;;  %v2373_v58 = vld [vmem:[%s2658_s0 + $0x1a0] sm:$0xff]  }
  0x14   :  { %1515 = vmatprep.subr.bf16.mxu0 %v2665_v0  ;;  %1535 = vmatprep.subr.bf16.mxu1 %v2665_v0  ;;  %v2364_v57 = vld [vmem:[%s2658_s0 + $0x1d8] sm:$0xff]   ;;  %v2378_v59 = vld [vmem:[%s2658_s0 + $0x1e0] sm:$0xff]   ;;  %v2387_v60 = vld [vmem:[%s2658_s0 + $0x1a8] sm:$0xff]  }
  0x15   :  { %2668 = vst [vmem:[#allocation2_spill] sm:$0xff] %v2387_v60  ;;  %v2392_v61 = vld [vmem:[%s2658_s0 + $0x1e8] sm:$0xff]   ;;  %v2401_v62 = vld [vmem:[%s2658_s0 + $0x1b0] sm:$0xff]  }
  0x16   :  { %2669 = vst [vmem:[#allocation3_spill] sm:$0xff] %v2392_v61  ;;  %v2406_v63 = vld [vmem:[%s2658_s0 + $0x1f0] sm:$0xff]  }
  0x1b   :  { %1516 = vmatpush3.bf16.xpose.msra.mxu0 %v2000_v7  ;;  %1536 = vmatpush3.bf16.xpose.msra.mxu1 %v2005_v8 }
  0x1c   :  { %1517 = vmatprep.subr.bf16.mxu0 %v2665_v0  ;;  %1537 = vmatprep.subr.bf16.mxu1 %v2665_v0 }
  0x23   :  { %1518 = vmatpush3.bf16.xpose.msra.mxu0 %v2014_v9  ;;  %1538 = vmatpush3.bf16.xpose.msra.mxu1 %v2019_v10 }
  0x24   :  { %1519 = vmatprep.subr.bf16.mxu0 %v2665_v0  ;;  %1539 = vmatprep.subr.bf16.mxu1 %v2665_v0 }
  0x2b   :  { %1520 = vmatpush3.bf16.xpose.msra.mxu0 %v2028_v11  ;;  %1540 = vmatpush3.bf16.xpose.msra.mxu1 %v2033_v12 }
  0x2c   :  { %1521 = vmatprep.subr.bf16.mxu0 %v2665_v0  ;;  %1541 = vmatprep.subr.bf16.mxu1 %v2665_v0 }
  0x33   :  { %1522 = vmatpush3.bf16.xpose.msra.mxu0 %v2042_v13  ;;  %1542 = vmatpush3.bf16.xpose.msra.mxu1 %v2047_v14 }
  0x34   :  { %1523 = vmatprep.subr.bf16.mxu0 %v2665_v0  ;;  %1543 = vmatprep.subr.bf16.mxu1 %v2665_v0 }
  0x3b   :  { %1524 = vmatpush3.bf16.xpose.msra.mxu0 %v2056_v15  ;;  %1544 = vmatpush3.bf16.xpose.msra.mxu1 %v2061_v16 }
  0x3c   :  { %1549 = vmatprep.subr.bf16.mxu0 %v2665_v0  ;;  %1569 = vmatprep.subr.bf16.mxu1 %v2665_v0 }
  0x42   :  { %1526 = vmatmul.mubr.bf16.vlgmr.msra.gmra.mrb[0].mxu0 %v2070_v17  ;;  %1546 = vmatmul.mubr.bf16.vlgmr.msra.gmra.mrb[0].mxu1 %v2070_v17 }
  0x43   :  { %1550 = vmatpush3.bf16.xpose.msra.mxu0 %v2075_v18  ;;  %1570 = vmatpush3.bf16.xpose.msra.mxu1 %v2080_v19 }
  0x44   :  { %1551 = vmatprep.subr.bf16.mxu0 %v2665_v0  ;;  %1571 = vmatprep.subr.bf16.mxu1 %v2665_v0 }
  0x45   :  { %1565 = vmatprep.mubr.msk.bf16.mxu0 %vm1928_vm0, %v2665_v0  ;;  %1585 = vmatprep.mubr.msk.bf16.mxu1 %vm1928_vm0, %v2665_v0 }
  0x4b   :  { %1552 = vmatpush3.bf16.xpose.msra.mxu0 %v2095_v20  ;;  %1572 = vmatpush3.bf16.xpose.msra.mxu1 %v2100_v21 }
  0x4c   :  { %1553 = vmatprep.subr.bf16.mxu0 %v2665_v0  ;;  %1573 = vmatprep.subr.bf16.mxu1 %v2665_v0 }
  0x53   :  { %1554 = vmatpush3.bf16.xpose.msra.mxu0 %v2109_v22  ;;  %1574 = vmatpush3.bf16.xpose.msra.mxu1 %v2114_v23 }
  0x54   :  { %1555 = vmatprep.subr.bf16.mxu0 %v2665_v0  ;;  %1575 = vmatprep.subr.bf16.mxu1 %v2665_v0 }
  0x5b   :  { %1556 = vmatpush3.bf16.xpose.msra.mxu0 %v2123_v24  ;;  %1576 = vmatpush3.bf16.xpose.msra.mxu1 %v2128_v25 }
  0x5c   :  { %1557 = vmatprep.subr.bf16.mxu0 %v2665_v0  ;;  %1577 = vmatprep.subr.bf16.mxu1 %v2665_v0 }
  0x63   :  { %1558 = vmatpush3.bf16.xpose.msra.mxu0 %v2137_v26  ;;  %1578 = vmatpush3.bf16.xpose.msra.mxu1 %v2142_v27 }
  0x64   :  { %1559 = vmatprep.subr.bf16.mxu0 %v2665_v0  ;;  %1579 = vmatprep.subr.bf16.mxu1 %v2665_v0 }
  0x6b   :  { %1560 = vmatpush3.bf16.xpose.msra.mxu0 %v2151_v28  ;;  %1580 = vmatpush3.bf16.xpose.msra.mxu1 %v2156_v29 }
  0x6c   :  { %1561 = vmatprep.subr.bf16.mxu0 %v2665_v0  ;;  %1581 = vmatprep.subr.bf16.mxu1 %v2665_v0 }
  0x73   :  { %1562 = vmatpush3.bf16.xpose.msra.mxu0 %v2165_v30  ;;  %1582 = vmatpush3.bf16.xpose.msra.mxu1 %v2170_v31 }
  0x74   :  { %1563 = vmatprep.subr.bf16.mxu0 %v2665_v0  ;;  %1583 = vmatprep.subr.bf16.mxu1 %v2665_v0 }
  0x7b   :  { %1564 = vmatpush3.bf16.xpose.msra.mxu0 %v2179_v32  ;;  %1584 = vmatpush3.bf16.xpose.msra.mxu1 %v2184_v33 }
  0x7c   :  { %1589 = vmatprep.subr.bf16.mxu0 %v2665_v0  ;;  %1609 = vmatprep.subr.bf16.mxu1 %v2665_v0 }
  0x82   :  { %1566 = vmatmul.mubr.bf16.vlgmr.msra.gmra.mrb[4].mxu0 %v2070_v17  ;;  %1586 = vmatmul.mubr.bf16.vlgmr.msra.gmra.mrb[4].mxu1 %v2070_v17 }
  0x83   :  { %1590 = vmatpush3.bf16.xpose.msra.mxu0 %v2193_v34  ;;  %1610 = vmatpush3.bf16.xpose.msra.mxu1 %v2198_v35 }
  0x84   :  { %1591 = vmatprep.subr.bf16.mxu0 %v2665_v0  ;;  %1611 = vmatprep.subr.bf16.mxu1 %v2665_v0 }
  0x85   :  { %1605 = vmatprep.mubr.msk.bf16.mxu0 %vm1928_vm0, %v2665_v0  ;;  %1625 = vmatprep.mubr.msk.bf16.mxu1 %vm1928_vm0, %v2665_v0 }
  0x8b   :  { %1592 = vmatpush3.bf16.xpose.msra.mxu0 %v2213_v36  ;;  %1612 = vmatpush3.bf16.xpose.msra.mxu1 %v2218_v37 }
  0x8c   :  { %1593 = vmatprep.subr.bf16.mxu0 %v2665_v0  ;;  %1613 = vmatprep.subr.bf16.mxu1 %v2665_v0 }
  0x93   :  { %1594 = vmatpush3.bf16.xpose.msra.mxu0 %v2227_v38  ;;  %1614 = vmatpush3.bf16.xpose.msra.mxu1 %v2232_v39 }
  0x94   :  { %1595 = vmatprep.subr.bf16.mxu0 %v2665_v0  ;;  %1615 = vmatprep.subr.bf16.mxu1 %v2665_v0 }
  0x9b   :  { %1596 = vmatpush3.bf16.xpose.msra.mxu0 %v2241_v40  ;;  %1616 = vmatpush3.bf16.xpose.msra.mxu1 %v2246_v41 }
  0x9c   :  { %1597 = vmatprep.subr.bf16.mxu0 %v2665_v0  ;;  %1617 = vmatprep.subr.bf16.mxu1 %v2665_v0 }
  0xa3   :  { %1598 = vmatpush3.bf16.xpose.msra.mxu0 %v2255_v42  ;;  %1618 = vmatpush3.bf16.xpose.msra.mxu1 %v2260_v43 }
  0xa4   :  { %1599 = vmatprep.subr.bf16.mxu0 %v2665_v0  ;;  %1619 = vmatprep.subr.bf16.mxu1 %v2665_v0 }
  0xab   :  { %1600 = vmatpush3.bf16.xpose.msra.mxu0 %v2269_v44  ;;  %1620 = vmatpush3.bf16.xpose.msra.mxu1 %v2274_v45 }
  0xac   :  { %1601 = vmatprep.subr.bf16.mxu0 %v2665_v0  ;;  %1621 = vmatprep.subr.bf16.mxu1 %v2665_v0 }
  0xb3   :  { %1602 = vmatpush3.bf16.xpose.msra.mxu0 %v2283_v46  ;;  %1622 = vmatpush3.bf16.xpose.msra.mxu1 %v2288_v47 }
  0xb4   :  { %1603 = vmatprep.subr.bf16.mxu0 %v2665_v0  ;;  %1623 = vmatprep.subr.bf16.mxu1 %v2665_v0 }
  0xbb   :  { %1604 = vmatpush3.bf16.xpose.msra.mxu0 %v2297_v48  ;;  %1624 = vmatpush3.bf16.xpose.msra.mxu1 %v2302_v49 }
  0xbc   :  { %1629 = vmatprep.subr.bf16.mxu0 %v2665_v0  ;;  %1649 = vmatprep.subr.bf16.mxu1 %v2665_v0 }
  0xc2   :  { %1606 = vmatmul.mubr.bf16.vlgmr.msra.gmra.mrb[8].mxu0 %v2070_v17  ;;  %1626 = vmatmul.mubr.bf16.vlgmr.msra.gmra.mrb[8].mxu1 %v2070_v17 }
  0xc3   :  { %1630 = vmatpush3.bf16.xpose.msra.mxu0 %v2311_v50  ;;  %1650 = vmatpush3.bf16.xpose.msra.mxu1 %v2316_v51 }
  0xc4   :  { %1631 = vmatprep.subr.bf16.mxu0 %v2665_v0  ;;  %1651 = vmatprep.subr.bf16.mxu1 %v2665_v0 }
  0xc5   :  { %1645 = vmatprep.mubr.msk.bf16.mxu0 %vm1928_vm0, %v2665_v0  ;;  %1665 = vmatprep.mubr.msk.bf16.mxu1 %vm1928_vm0, %v2665_v0 }
  0xcb   :  { %1632 = vmatpush3.bf16.xpose.msra.mxu0 %v2331_v52  ;;  %1652 = vmatpush3.bf16.xpose.msra.mxu1 %v2336_v53 }
  0xcc   :  { %1633 = vmatprep.subr.bf16.mxu0 %v2665_v0  ;;  %1653 = vmatprep.subr.bf16.mxu1 %v2665_v0 }
  0xd3   :  { %1634 = vmatpush3.bf16.xpose.msra.mxu0 %v2345_v54  ;;  %1654 = vmatpush3.bf16.xpose.msra.mxu1 %v2350_v55 }
  0xd4   :  { %1635 = vmatprep.subr.bf16.mxu0 %v2665_v0  ;;  %1655 = vmatprep.subr.bf16.mxu1 %v2665_v0 }
  0xdb   :  { %1636 = vmatpush3.bf16.xpose.msra.mxu0 %v2359_v56  ;;  %1656 = vmatpush3.bf16.xpose.msra.mxu1 %v2364_v57 }
  0xdc   :  { %1637 = vmatprep.subr.bf16.mxu0 %v2665_v0  ;;  %1657 = vmatprep.subr.bf16.mxu1 %v2665_v0 }
  0xe3   :  { %1638 = vmatpush3.bf16.xpose.msra.mxu0 %v2373_v58  ;;  %1658 = vmatpush3.bf16.xpose.msra.mxu1 %v2378_v59 }
  0xe4   :  { %1639 = vmatprep.subr.bf16.mxu0 %v2665_v0  ;;  %1659 = vmatprep.subr.bf16.mxu1 %v2665_v0 }
  0xeb   :  { %1640 = vmatpush3.bf16.xpose.msra.mxu0 %v2387_v60  ;;  %1660 = vmatpush3.bf16.xpose.msra.mxu1 %v2392_v61  ;;  %v2415_v61 = vld [vmem:[%s2658_s0 + $0x1b8] sm:$0xff]  }
  0xec   :  { %1641 = vmatprep.subr.bf16.mxu0 %v2665_v0  ;;  %1661 = vmatprep.subr.bf16.mxu1 %v2665_v0  ;;  %2670 = vst [vmem:[#allocation4_spill] sm:$0xff] %v2415_v61  ;;  %v2420_v60 = vld [vmem:[%s2658_s0 + $0x1f8] sm:$0xff]  }
  0xed   :  { %2671 = vst [vmem:[#allocation5_spill] sm:$0xff] %v2420_v60 }
  0xf3   :  { %1642 = vmatpush3.bf16.xpose.msra.mxu0 %v2401_v62  ;;  %1662 = vmatpush3.bf16.xpose.msra.mxu1 %v2406_v63 }
  0xf4   :  { %1643 = vmatprep.subr.bf16.mxu0 %v2665_v0  ;;  %1663 = vmatprep.subr.bf16.mxu1 %v2665_v0 }
  0xfb   :  { %1644 = vmatpush3.bf16.xpose.msra.mxu0 %v2415_v61  ;;  %1664 = vmatpush3.bf16.xpose.msra.mxu1 %v2420_v60 }
  0xfc   :  { %1669 = vmatprep.subr.bf16.mxu0 %v2665_v0  ;;  %1689 = vmatprep.subr.bf16.mxu1 %v2665_v0 }
 0x102   :  { %1646 = vmatmul.mubr.bf16.vlgmr.msra.gmra.mrb[12].mxu0 %v2070_v17  ;;  %1666 = vmatmul.mubr.bf16.vlgmr.msra.gmra.mrb[12].mxu1 %v2070_v17 }
 0x103   :  { %1670 = vmatpush3.bf16.msra.mxu0 %v1954_v1  ;;  %1690 = vmatpush3.bf16.msra.mxu1 %v1959_v2  ;;  %v856_v2 = vld [vmem:[%s2660_s1] sm:$0x1] }
 0x104   :  { %1671 = vmatprep.subr.bf16.mxu0 %v2665_v0  ;;  %1691 = vmatprep.subr.bf16.mxu1 %v2665_v0 }
 0x105   :  { %1685 = vmatprep.mubr.msk.bf16.mxu0 %vm1928_vm0, %v2665_v0  ;;  %1705 = vmatprep.mubr.msk.bf16.mxu1 %vm1928_vm0, %v2665_v0 }
 0x107   :  { %1672 = vmatpush3.bf16.msra.mxu0 %v1972_v3  ;;  %1692 = vmatpush3.bf16.msra.mxu1 %v1977_v4 }
 0x108   :  { %1673 = vmatprep.subr.bf16.mxu0 %v2665_v0  ;;  %1693 = vmatprep.subr.bf16.mxu1 %v2665_v0 }
 0x10b   :  { %1674 = vmatpush3.bf16.msra.mxu0 %v1986_v5  ;;  %1694 = vmatpush3.bf16.msra.mxu1 %v1991_v6 }
 0x10c   :  { %1675 = vmatprep.subr.bf16.mxu0 %v2665_v0  ;;  %1695 = vmatprep.subr.bf16.mxu1 %v2665_v0 }
 0x10f   :  { %1676 = vmatpush3.bf16.msra.mxu0 %v2000_v7  ;;  %1696 = vmatpush3.bf16.msra.mxu1 %v2005_v8 }
 0x110   :  { %1677 = vmatprep.subr.bf16.mxu0 %v2665_v0  ;;  %1697 = vmatprep.subr.bf16.mxu1 %v2665_v0 }
 0x113   :  { %1678 = vmatpush3.bf16.msra.mxu0 %v2014_v9  ;;  %1698 = vmatpush3.bf16.msra.mxu1 %v2019_v10  ;;  %v857_v9 = vld [vmem:[%s2660_s1 + $0x1] sm:$0x1] }
 0x114   :  { %1679 = vmatprep.subr.bf16.mxu0 %v2665_v0  ;;  %1699 = vmatprep.subr.bf16.mxu1 %v2665_v0 }
 0x115   :  { %v226_v1 = vpop.f32.mrb[0].mxu0  ;;  %v314_v4 = vpop.f32.mrb[0].mxu1 }
 0x116   :  { %v848_v3 = vmul.f32 0.17677669, %v226_v1  ;;  %v1527_v5 = vpop.f32.mrb[1].mxu0  ;;  %v849_v6 = vmul.f32 0.17677669, %v314_v4  ;;  %v1547_v7 = vpop.f32.mrb[1].mxu1 }
 0x117   :  { %v229_v8 = vpop.f32.mrb[2].mxu0  ;;  %1680 = vmatpush3.bf16.msra.mxu0 %v2028_v11  ;;  %v317_v10 = vpop.f32.mrb[2].mxu1  ;;  %1700 = vmatpush3.bf16.msra.mxu1 %v2033_v12 }
 0x118   :  { %v1528_v17 = vpop.f32.mrb[3].mxu0  ;;  %v864_v60 = vadd.f32 %v856_v2, %v848_v3  ;;  %1681 = vmatprep.subr.bf16.mxu0 %v2665_v0  ;;  %v1548_v1 = vpop.f32.mrb[3].mxu1  ;;  %1701 = vmatprep.subr.bf16.mxu1 %v2665_v0  ;;  %v865_v5 = vadd.f32 %v857_v9, %v849_v6 }
 0x11a   :  { %v873_v4 = vsel %vm872_vm1, %v864_v60, -inf  ;;  %v876_v11 = vsel %vm872_vm1, %v865_v5, -inf }
 0x11b   :  { %874 = vmax.xlane.f32.xlu0 %v873_v4  ;;  %1682 = vmatpush3.bf16.msra.mxu0 %v2042_v13  ;;  %v858_v13 = vld [vmem:[%s2660_s1 + $0x2] sm:$0x1] }
 0x11c   :  { %1683 = vmatprep.subr.bf16.mxu0 %v2665_v0  ;;  %1702 = vmatpush3.bf16.msra.mxu1 %v2047_v14 }
 0x11d   :  { %1703 = vmatprep.subr.bf16.mxu1 %v2665_v0 }
 0x11f   :  { %877 = vmax.xlane.f32.xlu0 %v876_v11  ;;  %1684 = vmatpush3.bf16.msra.mxu0 %v2056_v15  ;;  %v859_v15 = vld [vmem:[%s2660_s1 + $0x3] sm:$0x1] }
 0x120   :  { %1704 = vmatpush3.bf16.msra.mxu1 %v2061_v16  ;;  %1709 = vmatprep.subr.bf16.mxu0 %v2665_v0 }
 0x121   :  { %1729 = vmatprep.subr.bf16.mxu1 %v2665_v0 }
 0x155   :  { %v402_v12 = vpop.f32.mrb[4].mxu0  ;;  %v490_v14 = vpop.f32.mrb[4].mxu1 }
 0x156   :  { %v850_v2 = vmul.f32 0.17677669, %v402_v12  ;;  %v1567_v3 = vpop.f32.mrb[5].mxu0  ;;  %v851_v6 = vmul.f32 0.17677669, %v490_v14  ;;  %v1587_v7 = vpop.f32.mrb[5].mxu1 }
 0x157   :  { %v405_v8 = vpop.f32.mrb[6].mxu0  ;;  %v493_v16 = vpop.f32.mrb[6].mxu1  ;;  %v860_v14 = vld [vmem:[%s2660_s1 + $0x4] sm:$0x1] }
 0x158   :  { %v1568_v9 = vpop.f32.mrb[7].mxu0  ;;  %v2478_v10 = vadd.f32 %v858_v13, %v850_v2  ;;  %v1588_v17 = vpop.f32.mrb[7].mxu1  ;;  %v2482_v4 = vadd.f32 %v859_v15, %v851_v6  ;;  %v861_v2 = vld [vmem:[%s2660_s1 + $0x5] sm:$0x1] }
 0x15a   :  { %v879_v1 = vsel %vm872_vm1, %v2478_v10, -inf  ;;  %v882_v11 = vsel %vm872_vm1, %v2482_v4, -inf }
 0x15b   :  { %880 = vmax.xlane.f32.xlu1 %v879_v1 }
 0x15f   :  { %883 = vmax.xlane.f32.xlu1 %v882_v11 }
 0x195   :  { %v578_v12 = vpop.f32.mrb[8].mxu0  ;;  %v666_v7 = vpop.f32.mrb[8].mxu1 }
 0x196   :  { %v852_v3 = vmul.f32 0.17677669, %v578_v12  ;;  %v1607_v13 = vpop.f32.mrb[9].mxu0  ;;  %v853_v8 = vmul.f32 0.17677669, %v666_v7  ;;  %v1627_v6 = vpop.f32.mrb[9].mxu1 }
 0x197   :  { %v581_v15 = vpop.f32.mrb[10].mxu0  ;;  %v669_v16 = vpop.f32.mrb[10].mxu1 }
 0x198   :  { %v1608_v9 = vpop.f32.mrb[11].mxu0  ;;  %v2492_v17 = vadd.f32 %v860_v14, %v852_v3  ;;  %v1628_v1 = vpop.f32.mrb[11].mxu1  ;;  %v2494_v11 = vadd.f32 %v861_v2, %v853_v8  ;;  %v2672_v8 = vmov 0.0  }
 0x19a   :  { %v885_v0 = vsel %vm872_vm1, %v2492_v17, -inf  ;;  %v888_v12 = vsel %vm872_vm1, %v2494_v11, -inf }
 0x19b   :  { %886 = vmax.xlane.f32.xlu0 %v885_v0  ;;  %889 = vmax.xlane.f32.xlu1 %v888_v12 }
 0x1a8   :  { %v875_v13 = vpop.xlane.xlu0 %874 }
 0x1a9   :  { %v897_v61 = vsub.f32 %v864_v60, %v875_v13 }
 0x1ab   :  { %v905_v7 = vmul.f32 1.442695, %v897_v61 }
 0x1ac   :  { %v878_v6 = vpop.xlane.xlu0 %877 }
 0x1ad   :  { %1895 = vpow2.f32 %v905_v7  ;;  %v898_v15 = vsub.f32 %v865_v5, %v878_v6 }
 0x1af   :  { %v907_v16 = vmul.f32 1.442695, %v898_v15 }
 0x1b1   :  { %1897 = vpow2.f32 %v907_v16 }
 0x1b7   :  { %v1896_v14 = vpop.eup %1895 }
 0x1b8   :  { %v945_v3 = vpack.c.bf16 %v1896_v14, %v1896_v14 }
 0x1ba   :  { %1686 = vmatmul.mubr.bf16.vlgmr.msra.gmra.mrb[16].mxu0 %v945_v3 }
 0x1bb   :  { %v1898_v2 = vpop.eup %1897  ;;  %1710 = vmatpush3.bf16.msra.mxu0 %v2075_v18  ;;  %1725 = vmatprep.mubr.msk.bf16.mxu0 %vm1928_vm0, %v2672_v8  ;;  %v862_v18 = vld [vmem:[%s2660_s1 + $0x6] sm:$0x1] }
 0x1bc   :  { %v946_v9 = vpack.c.bf16 %v1898_v2, %v1898_v2  ;;  %1711 = vmatprep.subr.bf16.mxu0 %v2672_v8 }
 0x1be   :  { %1706 = vmatmul.mubr.bf16.vlgmr.msra.gmra.mrb[16].mxu1 %v946_v9 }
 0x1bf   :  { %1712 = vmatpush3.bf16.msra.mxu0 %v2095_v20  ;;  %1730 = vmatpush3.bf16.msra.mxu1 %v2080_v19 }
 0x1c0   :  { %1713 = vmatprep.subr.bf16.mxu0 %v2672_v8  ;;  %1731 = vmatprep.subr.bf16.mxu1 %v2672_v8 }
 0x1c1   :  { %1745 = vmatprep.mubr.msk.bf16.mxu1 %vm1928_vm0, %v2672_v8 }
 0x1c3   :  { %1714 = vmatpush3.bf16.msra.mxu0 %v2109_v22  ;;  %1732 = vmatpush3.bf16.msra.mxu1 %v2100_v21  ;;  %v863_v22 = vld [vmem:[%s2660_s1 + $0x7] sm:$0x1] }
 0x1c4   :  { %1715 = vmatprep.subr.bf16.mxu0 %v2672_v8  ;;  %1733 = vmatprep.subr.bf16.mxu1 %v2672_v8 }
 0x1c7   :  { %1716 = vmatpush3.bf16.msra.mxu0 %v2123_v24  ;;  %1734 = vmatpush3.bf16.msra.mxu1 %v2114_v23 }
 0x1c8   :  { %1717 = vmatprep.subr.bf16.mxu0 %v2672_v8  ;;  %1735 = vmatprep.subr.bf16.mxu1 %v2672_v8 }
 0x1cb   :  { %1718 = vmatpush3.bf16.msra.mxu0 %v2137_v26  ;;  %1736 = vmatpush3.bf16.msra.mxu1 %v2128_v25 }
 0x1cc   :  { %1719 = vmatprep.subr.bf16.mxu0 %v2672_v8  ;;  %1737 = vmatprep.subr.bf16.mxu1 %v2672_v8 }
 0x1cf   :  { %1720 = vmatpush3.bf16.msra.mxu0 %v2151_v28  ;;  %1738 = vmatpush3.bf16.msra.mxu1 %v2142_v27 }
 0x1d0   :  { %1721 = vmatprep.subr.bf16.mxu0 %v2672_v8  ;;  %1739 = vmatprep.subr.bf16.mxu1 %v2672_v8 }
 0x1d3   :  { %1722 = vmatpush3.bf16.msra.mxu0 %v2165_v30  ;;  %1740 = vmatpush3.bf16.msra.mxu1 %v2156_v29 }
 0x1d4   :  { %1723 = vmatprep.subr.bf16.mxu0 %v2672_v8  ;;  %1741 = vmatprep.subr.bf16.mxu1 %v2672_v8 }
 0x1d5   :  { %v754_v0 = vpop.f32.mrb[12].mxu0  ;;  %v842_v20 = vpop.f32.mrb[12].mxu1 }
 0x1d6   :  { %v854_v19 = vmul.f32 0.17677669, %v754_v0  ;;  %v1647_v21 = vpop.f32.mrb[13].mxu0  ;;  %v855_v23 = vmul.f32 0.17677669, %v842_v20  ;;  %v1667_v24 = vpop.f32.mrb[13].mxu1 }
 0x1d7   :  { %v757_v25 = vpop.f32.mrb[14].mxu0  ;;  %1724 = vmatpush3.bf16.msra.mxu0 %v2179_v32  ;;  %1742 = vmatpush3.bf16.msra.mxu1 %v2170_v31  ;;  %v845_v26 = vpop.f32.mrb[14].mxu1  ;;  %v921_v31 = vsel %vm872_vm1, %v1896_v14, 0.0  ;;  %v924_v32 = vsel %vm872_vm1, %v1898_v2, 0.0 }
 0x1d8   :  { %v1648_v27 = vpop.f32.mrb[15].mxu0  ;;  %v2538_v28 = vadd.f32 %v862_v18, %v854_v19  ;;  %1743 = vmatprep.subr.bf16.mxu1 %v2672_v8  ;;  %1749 = vmatprep.subr.bf16.mxu0 %v2672_v8  ;;  %v1668_v29 = vpop.f32.mrb[15].mxu1  ;;  %v2542_v30 = vadd.f32 %v863_v22, %v855_v23 }
 0x1da   :  { %v891_v60 = vsel %vm872_vm1, %v2538_v28, -inf  ;;  %v894_v61 = vsel %vm872_vm1, %v2542_v30, -inf }
 0x1db   :  { %892 = vmax.xlane.f32.xlu0 %v891_v60  ;;  %1744 = vmatpush3.bf16.msra.mxu1 %v2184_v33 }
 0x1dc   :  { %895 = vmax.xlane.f32.xlu1 %v894_v61  ;;  %1769 = vmatprep.subr.bf16.mxu1 %v2672_v8 }
 0x1df   :  { %922 = vadd.xlane.f32.xlu0 %v921_v31 }
 0x1e0   :  { %925 = vadd.xlane.f32.xlu1 %v924_v32 }
 0x1e8   :  { %v881_v5 = vpop.xlane.xlu1 %880 }
 0x1e9   :  { %v899_v1 = vsub.f32 %v2478_v10, %v881_v5 }
 0x1eb   :  { %v909_v12 = vmul.f32 1.442695, %v899_v1 }
 0x1ec   :  { %v884_v13 = vpop.xlane.xlu1 %883 }
 0x1ed   :  { %1899 = vpow2.f32 %v909_v12  ;;  %v900_v7 = vsub.f32 %v2482_v4, %v884_v13 }
 0x1ef   :  { %v911_v6 = vmul.f32 1.442695, %v900_v7 }
 0x1f1   :  { %1901 = vpow2.f32 %v911_v6 }
 0x1f7   :  { %v1900_v33 = vpop.eup %1899 }
 0x1f8   :  { %v927_v15 = vsel %vm872_vm1, %v1900_v33, 0.0  ;;  %v947_v16 = vpack.c.bf16 %v1900_v33, %v1900_v33 }
 0x1f9   :  { %928 = vadd.xlane.f32.xlu0 %v927_v15 }
 0x1fa   :  { %1726 = vmatmul.mubr.bf16.vlgmr.msra.gmra.mrb[20].mxu0 %v947_v16 }
 0x1fb   :  { %v1902_v14 = vpop.eup %1901  ;;  %1750 = vmatpush3.bf16.msra.mxu0 %v2193_v34  ;;  %1765 = vmatprep.mubr.msk.bf16.mxu0 %vm1928_vm0, %v2672_v8 }
 0x1fc   :  { %v930_v10 = vsel %vm872_vm1, %v1902_v14, 0.0  ;;  %v948_v3 = vpack.c.bf16 %v1902_v14, %v1902_v14  ;;  %1751 = vmatprep.subr.bf16.mxu0 %v2672_v8 }
 0x1fd   :  { %931 = vadd.xlane.f32.xlu1 %v930_v10 }
 0x1fe   :  { %1746 = vmatmul.mubr.bf16.vlgmr.msra.gmra.mrb[20].mxu1 %v948_v3 }
 0x1ff   :  { %1770 = vmatpush3.bf16.msra.mxu1 %v2198_v35  ;;  %1752 = vmatpush3.bf16.msra.mxu0 %v2213_v36 }
 0x200   :  { %1771 = vmatprep.subr.bf16.mxu1 %v2672_v8  ;;  %1753 = vmatprep.subr.bf16.mxu0 %v2672_v8 }
 0x201   :  { %1785 = vmatprep.mubr.msk.bf16.mxu1 %vm1928_vm0, %v2672_v8 }
 0x203   :  { %1772 = vmatpush3.bf16.msra.mxu1 %v2218_v37  ;;  %1754 = vmatpush3.bf16.msra.mxu0 %v2227_v38 }
 0x204   :  { %1773 = vmatprep.subr.bf16.mxu1 %v2672_v8  ;;  %1755 = vmatprep.subr.bf16.mxu0 %v2672_v8 }
 0x207   :  { %1774 = vmatpush3.bf16.msra.mxu1 %v2232_v39  ;;  %1756 = vmatpush3.bf16.msra.mxu0 %v2241_v40 }
 0x208   :  { %1775 = vmatprep.subr.bf16.mxu1 %v2672_v8  ;;  %1757 = vmatprep.subr.bf16.mxu0 %v2672_v8 }
 0x20b   :  { %1776 = vmatpush3.bf16.msra.mxu1 %v2246_v41  ;;  %1758 = vmatpush3.bf16.msra.mxu0 %v2255_v42 }
 0x20c   :  { %1777 = vmatprep.subr.bf16.mxu1 %v2672_v8  ;;  %1759 = vmatprep.subr.bf16.mxu0 %v2672_v8 }
 0x20f   :  { %1778 = vmatpush3.bf16.msra.mxu1 %v2260_v43  ;;  %1760 = vmatpush3.bf16.msra.mxu0 %v2269_v44 }
 0x210   :  { %1779 = vmatprep.subr.bf16.mxu1 %v2672_v8  ;;  %1761 = vmatprep.subr.bf16.mxu0 %v2672_v8 }
 0x213   :  { %1780 = vmatpush3.bf16.msra.mxu1 %v2274_v45  ;;  %1762 = vmatpush3.bf16.msra.mxu0 %v2283_v46  ;;  %v2673_v46 = vld [vmem:[#allocation2_spill] sm:$0xff] }
 0x214   :  { %1781 = vmatprep.subr.bf16.mxu1 %v2672_v8  ;;  %1763 = vmatprep.subr.bf16.mxu0 %v2672_v8 }
 0x217   :  { %1782 = vmatpush3.bf16.msra.mxu1 %v2288_v47  ;;  %1764 = vmatpush3.bf16.msra.mxu0 %v2297_v48  ;;  %v2674_v47 = vld [vmem:[#allocation3_spill] sm:$0xff]  ;;  %v2675_v48 = vld [vmem:[#allocation4_spill] sm:$0xff] }
 0x218   :  { %1783 = vmatprep.subr.bf16.mxu1 %v2672_v8  ;;  %1789 = vmatprep.subr.bf16.mxu0 %v2672_v8 }
 0x21b   :  { %1784 = vmatpush3.bf16.msra.mxu1 %v2302_v49  ;;  %v2676_v49 = vld [vmem:[#allocation5_spill] sm:$0xff] }
 0x21c   :  { %1809 = vmatprep.subr.bf16.mxu1 %v2672_v8 }
 0x228   :  { %v887_v34 = vpop.xlane.xlu0 %886  ;;  %v890_v35 = vpop.xlane.xlu1 %889 }
 0x229   :  { %v901_v36 = vsub.f32 %v2492_v17, %v887_v34  ;;  %v902_v37 = vsub.f32 %v2494_v11, %v890_v35 }
 0x22b   :  { %v913_v38 = vmul.f32 1.442695, %v901_v36  ;;  %v915_v39 = vmul.f32 1.442695, %v902_v37 }
 0x22d   :  { %1903 = vpow2.f32 %v913_v38 }
 0x22e   :  { %1905 = vpow2.f32 %v915_v39 }
 0x237   :  { %v1904_v40 = vpop.eup %1903 }
 0x238   :  { %v1906_v41 = vpop.eup %1905  ;;  %v933_v42 = vsel %vm872_vm1, %v1904_v40, 0.0  ;;  %v949_v43 = vpack.c.bf16 %v1904_v40, %v1904_v40 }
 0x239   :  { %v936_v44 = vsel %vm872_vm1, %v1906_v41, 0.0  ;;  %934 = vadd.xlane.f32.xlu0 %v933_v42  ;;  %v950_v45 = vpack.c.bf16 %v1906_v41, %v1906_v41 }
 0x23a   :  { %937 = vadd.xlane.f32.xlu1 %v936_v44  ;;  %1766 = vmatmul.mubr.bf16.vlgmr.msra.gmra.mrb[24].mxu0 %v949_v43 }
 0x23b   :  { %1786 = vmatmul.mubr.bf16.vlgmr.msra.gmra.mrb[24].mxu1 %v950_v45  ;;  %1790 = vmatpush3.bf16.msra.mxu0 %v2311_v50 }
 0x23c   :  { %1810 = vmatpush3.bf16.msra.mxu1 %v2316_v51  ;;  %1791 = vmatprep.subr.bf16.mxu0 %v2672_v8 }
 0x23d   :  { %1811 = vmatprep.subr.bf16.mxu1 %v2672_v8  ;;  %1825 = vmatprep.mubr.msk.bf16.mxu1 %vm1928_vm0, %v2672_v8 }
 0x23e   :  { %1805 = vmatprep.mubr.msk.bf16.mxu0 %vm1928_vm0, %v2672_v8 }
 0x23f   :  { %1792 = vmatpush3.bf16.msra.mxu0 %v2331_v52 }
 0x240   :  { %1812 = vmatpush3.bf16.msra.mxu1 %v2336_v53  ;;  %1793 = vmatprep.subr.bf16.mxu0 %v2672_v8 }
 0x241   :  { %1813 = vmatprep.subr.bf16.mxu1 %v2672_v8 }
 0x243   :  { %1794 = vmatpush3.bf16.msra.mxu0 %v2345_v54 }
 0x244   :  { %1814 = vmatpush3.bf16.msra.mxu1 %v2350_v55  ;;  %1795 = vmatprep.subr.bf16.mxu0 %v2672_v8 }
 0x245   :  { %1815 = vmatprep.subr.bf16.mxu1 %v2672_v8 }
 0x247   :  { %1796 = vmatpush3.bf16.msra.mxu0 %v2359_v56 }
 0x248   :  { %1816 = vmatpush3.bf16.msra.mxu1 %v2364_v57  ;;  %1797 = vmatprep.subr.bf16.mxu0 %v2672_v8 }
 0x249   :  { %1817 = vmatprep.subr.bf16.mxu1 %v2672_v8 }
 0x24b   :  { %1798 = vmatpush3.bf16.msra.mxu0 %v2373_v58 }
 0x24c   :  { %1818 = vmatpush3.bf16.msra.mxu1 %v2378_v59  ;;  %1799 = vmatprep.subr.bf16.mxu0 %v2672_v8 }
 0x24d   :  { %1819 = vmatprep.subr.bf16.mxu1 %v2672_v8 }
 0x24f   :  { %1800 = vmatpush3.bf16.msra.mxu0 %v2673_v46 }
 0x250   :  { %1820 = vmatpush3.bf16.msra.mxu1 %v2674_v47  ;;  %1801 = vmatprep.subr.bf16.mxu0 %v2672_v8 }
 0x251   :  { %1821 = vmatprep.subr.bf16.mxu1 %v2672_v8 }
 0x253   :  { %1802 = vmatpush3.bf16.msra.mxu0 %v2401_v62 }
 0x254   :  { %1822 = vmatpush3.bf16.msra.mxu1 %v2406_v63  ;;  %1803 = vmatprep.subr.bf16.mxu0 %v2672_v8 }
 0x255   :  { %1823 = vmatprep.subr.bf16.mxu1 %v2672_v8 }
 0x257   :  { %1804 = vmatpush3.bf16.msra.mxu0 %v2675_v48 }
 0x258   :  { %1824 = vmatpush3.bf16.msra.mxu1 %v2676_v49 }
 0x268   :  { %v893_v50 = vpop.xlane.xlu0 %892 }
 0x269   :  { %v896_v51 = vpop.xlane.xlu1 %895  ;;  %v903_v52 = vsub.f32 %v2538_v28, %v893_v50 }
 0x26a   :  { %v904_v53 = vsub.f32 %v2542_v30, %v896_v51 }
 0x26b   :  { %v917_v54 = vmul.f32 1.442695, %v903_v52 }
 0x26c   :  { %v919_v55 = vmul.f32 1.442695, %v904_v53  ;;  %v923_v4 = vpop.xlane.xlu0 %922 }
 0x26d   :  { %1907 = vpow2.f32 %v917_v54  ;;  %v926_v17 = vpop.xlane.xlu1 %925 }
 0x26e   :  { %1909 = vpow2.f32 %v919_v55 }
 0x26f   :  { %1911 = vrcp.f32 %v923_v4 }
 0x270   :  { %1913 = vrcp.f32 %v926_v17 }
 0x277   :  { %v1908_v56 = vpop.eup %1907 }
 0x278   :  { %v1910_v57 = vpop.eup %1909  ;;  %v939_v58 = vsel %vm872_vm1, %v1908_v56, 0.0  ;;  %v951_v59 = vpack.c.bf16 %v1908_v56, %v1908_v56 }
 0x279   :  { %v942_v62 = vsel %vm872_vm1, %v1910_v57, 0.0  ;;  %940 = vadd.xlane.f32.xlu0 %v939_v58  ;;  %v952_v63 = vpack.c.bf16 %v1910_v57, %v1910_v57  ;;  %v1912_v11 = vpop.eup %1911 }
 0x27a   :  { %943 = vadd.xlane.f32.xlu1 %v942_v62  ;;  %1806 = vmatmul.mubr.bf16.vlgmr.msra.gmra.mrb[28].mxu0 %v951_v59  ;;  %v1914_v19 = vpop.eup %1913 }
 0x27b   :  { %1826 = vmatmul.mubr.bf16.vlgmr.msra.gmra.mrb[28].mxu1 %v952_v63 }
 0x286   :  { %v929_v25 = vpop.xlane.xlu0 %928 }
 0x287   :  { %1915 = vrcp.f32 %v929_v25 }
 0x28a   :  { %v932_v26 = vpop.xlane.xlu1 %931 }
 0x28b   :  { %1917 = vrcp.f32 %v932_v26 }
 0x28d   :  { %v987_v2 = vpop.f32.mrb[16].mxu0 }
 0x28e   :  { %v1281_v8 = vmul.f32 %v1912_v11, %v987_v2  ;;  %v1687_v9 = vpop.f32.mrb[17].mxu0 }
 0x28f   :  { %v990_v0 = vpop.f32.mrb[18].mxu0 }
 0x290   :  { %1289 = vst [vmem:[%s2661_s3] sm:$0x1] %v1281_v8  ;;  %v1688_v18 = vpop.f32.mrb[19].mxu0 }
 0x291   :  { %v1027_v20 = vpop.f32.mrb[16].mxu1  ;;  %v1916_v27 = vpop.eup %1915 }
 0x292   :  { %v1282_v21 = vmul.f32 %v1914_v19, %v1027_v20  ;;  %v1707_v22 = vpop.f32.mrb[17].mxu1 }
 0x293   :  { %v1030_v23 = vpop.f32.mrb[18].mxu1 }
 0x294   :  { %1290 = vst [vmem:[%s2661_s3 + $0x1] sm:$0x1] %v1282_v21  ;;  %v1708_v24 = vpop.f32.mrb[19].mxu1 }
 0x295   :  { %v1918_v31 = vpop.eup %1917 }
 0x2c6   :  { %v935_v7 = vpop.xlane.xlu0 %934 }
 0x2c7   :  { %v938_v6 = vpop.xlane.xlu1 %937  ;;  %1919 = vrcp.f32 %v935_v7 }
 0x2c8   :  { %1921 = vrcp.f32 %v938_v6 }
 0x2cd   :  { %v1067_v28 = vpop.f32.mrb[20].mxu0 }
 0x2ce   :  { %v1283_v29 = vmul.f32 %v1916_v27, %v1067_v28  ;;  %v1727_v30 = vpop.f32.mrb[21].mxu0 }
 0x2cf   :  { %v1070_v60 = vpop.f32.mrb[22].mxu0 }
 0x2d0   :  { %1291 = vst [vmem:[%s2661_s3 + $0x2] sm:$0x1] %v1283_v29  ;;  %v1728_v61 = vpop.f32.mrb[23].mxu0 }
 0x2d1   :  { %v1107_v32 = vpop.f32.mrb[20].mxu1  ;;  %v1920_v33 = vpop.eup %1919 }
 0x2d2   :  { %v1284_v5 = vmul.f32 %v1918_v31, %v1107_v32  ;;  %v1747_v1 = vpop.f32.mrb[21].mxu1  ;;  %v1922_v16 = vpop.eup %1921 }
 0x2d3   :  { %v1110_v12 = vpop.f32.mrb[22].mxu1 }
 0x2d4   :  { %1292 = vst [vmem:[%s2661_s3 + $0x3] sm:$0x1] %v1284_v5  ;;  %v1748_v13 = vpop.f32.mrb[23].mxu1 }
 0x306   :  { %v941_v40 = vpop.xlane.xlu0 %940 }
 0x307   :  { %v944_v41 = vpop.xlane.xlu1 %943  ;;  %1923 = vrcp.f32 %v941_v40 }
 0x308   :  { %1925 = vrcp.f32 %v944_v41 }
 0x30d   :  { %v1147_v15 = vpop.f32.mrb[24].mxu0 }
 0x30e   :  { %v1285_v14 = vmul.f32 %v1920_v33, %v1147_v15  ;;  %v1187_v10 = vpop.f32.mrb[24].mxu1  ;;  %v1767_v3 = vpop.f32.mrb[25].mxu0 }
 0x30f   :  { %v1286_v34 = vmul.f32 %v1922_v16, %v1187_v10  ;;  %v1787_v35 = vpop.f32.mrb[25].mxu1  ;;  %v1150_v36 = vpop.f32.mrb[26].mxu0 }
 0x310   :  { %1293 = vst [vmem:[%s2661_s3 + $0x4] sm:$0x1] %v1285_v14  ;;  %v1190_v37 = vpop.f32.mrb[26].mxu1  ;;  %v1768_v38 = vpop.f32.mrb[27].mxu0 }
 0x311   :  { %1294 = vst [vmem:[%s2661_s3 + $0x5] sm:$0x1] %v1286_v34  ;;  %v1788_v39 = vpop.f32.mrb[27].mxu1  ;;  %v1924_v42 = vpop.eup %1923 }
 0x312   :  { %v1926_v44 = vpop.eup %1925 }
 0x34d   :  { %v1227_v43 = vpop.f32.mrb[28].mxu0 }
 0x34e   :  { %v1287_v45 = vmul.f32 %v1924_v42, %v1227_v43  ;;  %v1267_v46 = vpop.f32.mrb[28].mxu1  ;;  %v1807_v47 = vpop.f32.mrb[29].mxu0 }
 0x34f   :  { %v1288_v48 = vmul.f32 %v1926_v44, %v1267_v46  ;;  %v1827_v49 = vpop.f32.mrb[29].mxu1  ;;  %v1230_v50 = vpop.f32.mrb[30].mxu0 }
 0x350   :  { %1295 = vst [vmem:[%s2661_s3 + $0x6] sm:$0x1] %v1287_v45  ;;  %v1270_v51 = vpop.f32.mrb[30].mxu1  ;;  %v1808_v52 = vpop.f32.mrb[31].mxu0 }
 0x351   :  { %1296 = vst [vmem:[%s2661_s3 + $0x7] sm:$0x1] %v1288_v48  ;;  %v1828_v53 = vpop.f32.mrb[31].mxu1 }

</bundles_post_ra>
